<compile_context>
chip_gen: v7x
topology: tpu7x:2x2x1
jax: 0.10.0
libtpu: 0.0.40
codegen_flags: <defaults>
</compile_context>

<pallas_src>
import functools
import numpy as np
import jax
import jax.numpy as jnp
from jax.experimental import pallas as pl
from jax.experimental.pallas import tpu as pltpu


LANES = 128
SUBLANES = 8
COLS = 512            # lane-dense width (multiple of 128)
MAX_BLOCK_ROWS = 512  # 512*512*4B = 1 MiB per block -> fits every generation


# ----------------------------- Pallas kernel ---------------------------------
def _power_compression_kernel(x_ref, o_ref, *, scale, offset, power):
    # out = (x*scale + offset) ** power, computed as exp(power*log(y)).
    # Identical to torch.pow on the y > 0 domain the module operates in
    # (y == 0 -> 0, y < 0 -> NaN, matching torch.pow for fractional power).
    y = x_ref[...] * scale + offset
    o_ref[...] = jnp.exp(power * jnp.log(y))


def _round_up(x, m):
    return ((x + m - 1) // m) * m


def _clipped_grad_power_pallas(x, *, scale, offset, power):
    orig_shape = x.shape
    orig_dtype = x.dtype
    flat = x.reshape(-1).astype(jnp.float32)
    n = flat.shape[0]

    # Lane/sublane-dense 2D layout.
    rows = _round_up(max(pl.cdiv(n, COLS), 1), SUBLANES)
    if rows >= 2 * SUBLANES:
        # >= 2 grid steps when possible (v7x megacore sharding), capped block.
        block_rows = min(MAX_BLOCK_ROWS, _round_up(pl.cdiv(rows, 2), SUBLANES))
    else:
        block_rows = rows
    rows_padded = _round_up(rows, block_rows)

    padded = jnp.pad(flat, (0, rows_padded * COLS - n))
    x2d = padded.reshape(rows_padded, COLS)
    grid = (rows_padded // block_rows,)

    out2d = pl.pallas_call(
        functools.partial(_power_compression_kernel,
                          scale=scale, offset=offset, power=power),
        out_shape=jax.ShapeDtypeStruct((rows_padded, COLS), jnp.float32),
        grid_spec=pltpu.PrefetchScalarGridSpec(
            num_scalar_prefetch=0,
            grid=grid,
            in_specs=[pl.BlockSpec((block_rows, COLS), lambda i: (i, 0))],
            out_specs=pl.BlockSpec((block_rows, COLS), lambda i: (i, 0)),
        ),
        compiler_params=pltpu.CompilerParams(
            dimension_semantics=("parallel",)),
    )(x2d)

    return out2d.reshape(-1)[:n].reshape(orig_shape).astype(orig_dtype)


# ----------------------------- module-equivalent wrapper ---------------------
class ClippedGradPower:
    """JAX/Pallas equivalent of the PyTorch ClippedGradPower module (forward)."""

    def __init__(self, compression_kwargs):
        self.compression_kwargs = dict(compression_kwargs)
        self.scale = float(compression_kwargs.get("scale", 1.0))
        self.offset = float(compression_kwargs.get("offset", 1e-8))
        self.power = float(compression_kwargs.get("power", 0.3))
        # clip_value only affects the custom backward (gradient clipping);
        # the forward pass is unchanged.
        self.clip_value = float(compression_kwargs.get("clip_value", 5.0))
        # TODO(synk): gradient clipping (custom VJP) not implemented; only the
        # forward pass is required here.

    def _compress(self, wav):
        return _clipped_grad_power_pallas(
            wav, scale=self.scale, offset=self.offset, power=self.power)

    def __call__(self, foreground_wav, background_wav):
        foreground_wav = self._compress(foreground_wav)
        if background_wav is not None:
            background_wav = self._compress(background_wav)
        return (foreground_wav, background_wav)


# ----------------------------- pure-JAX reference (for sanity) ---------------
def _reference(x, scale, offset, power):
    return jnp.power(x.astype(jnp.float32) * scale + offset, power)


if __name__ == "__main__":
    key = jax.random.PRNGKey(0)
    k_fg, k_bg = jax.random.split(key)
    B, T = 2, 8000
    # The compression is applied to non-negative (rectified / cochleagram)
    # signals in the pipeline; use |N(0,1)| so the fractional power is
    # well-defined (matches torch.pow's domain).
    fg = jnp.abs(jax.random.normal(k_fg, (B, T), dtype=jnp.float32))
    bg = jnp.abs(jax.random.normal(k_bg, (B, T), dtype=jnp.float32))

    compression_kwargs = dict(scale=1.0, offset=1e-8, power=0.3, clip_value=5.0)
    mod = ClippedGradPower(compression_kwargs)

    fg_out, bg_out = mod(fg, bg)
    fg_out = jax.block_until_ready(fg_out)
    bg_out = jax.block_until_ready(bg_out)

    assert fg_out.shape == fg.shape and fg_out.dtype == fg.dtype, fg_out.shape
    assert bg_out.shape == bg.shape, bg_out.shape

    np.testing.assert_allclose(
        np.asarray(fg_out), np.asarray(_reference(fg, 1.0, 1e-8, 0.3)),
        rtol=1e-4, atol=1e-5)
    np.testing.assert_allclose(
        np.asarray(bg_out), np.asarray(_reference(bg, 1.0, 1e-8, 0.3)),
        rtol=1e-4, atol=1e-5)

    # background_wav=None path must pass None through.
    fg_only, none_out = mod(fg, None)
    jax.block_until_ready(fg_only)
    assert none_out is None

    print("KERNEL_OK")
</pallas_src>

<mosaic_0001>
module attributes {stable_mosaic.version = 11 : i64} {
  func.func @_power_compression_kernel(%arg0: i32, %arg1: memref<16x512xf32, #tpu.memory_space<vmem>>, %arg2: memref<16x512xf32, #tpu.memory_space<vmem>>) attributes {dimension_semantics = [#tpu.dimension_semantics<parallel>], iteration_bounds = array<i64: 2>, scalar_prefetch = 0 : i64, scratch_operands = 0 : i64, tpu.core_type = #tpu.core_type<tc>, window_params = [{transform_indices = @transform_0, window_bounds = array<i64: 16, 512>}, {transform_indices = @transform_1, window_bounds = array<i64: 16, 512>}]} {
    %c0 = arith.constant 0 : index
    %c0_0 = arith.constant 0 : index
    %0 = vector.load %arg1[%c0, %c0_0] : memref<16x512xf32, #tpu.memory_space<vmem>>, vector<16x512xf32>
    %cst = arith.constant 1.000000e+00 : f32
    %1 = vector.broadcast %cst : f32 to vector<16x512xf32>
    %2 = arith.mulf %0, %1 : vector<16x512xf32>
    %cst_1 = arith.constant 9.99999993E-9 : f32
    %3 = vector.broadcast %cst_1 : f32 to vector<16x512xf32>
    %4 = arith.addf %2, %3 : vector<16x512xf32>
    %5 = math.log %4 : vector<16x512xf32>
    %cst_2 = arith.constant 3.000000e-01 : f32
    %6 = vector.broadcast %cst_2 : f32 to vector<16x512xf32>
    %7 = arith.mulf %6, %5 : vector<16x512xf32>
    %8 = math.exp %7 : vector<16x512xf32>
    %c0_3 = arith.constant 0 : index
    %c0_4 = arith.constant 0 : index
    %9 = vector.load %arg2[%c0_3, %c0_4] : memref<16x512xf32, #tpu.memory_space<vmem>>, vector<16x512xf32>
    tpu.vector_store %arg2[%c0_3, %c0_4], %8 {strides = array<i32>} : memref<16x512xf32, #tpu.memory_space<vmem>>, vector<16x512xf32>,
    return
  }
  func.func @transform_0(%arg0: i32) -> (i32, i32) {
    %c0_i32 = arith.constant 0 : i32
    %c0_i32_0 = arith.constant 0 : i32
    return %arg0, %c0_i32 : i32, i32
  }
  func.func @transform_1(%arg0: i32) -> (i32, i32) {
    %c0_i32 = arith.constant 0 : i32
    %c0_i32_0 = arith.constant 0 : i32
    return %arg0, %c0_i32 : i32, i32
  }
}

</mosaic_0001>

<bundles_post_ra>
// kernel: tpu_custom_call.1
= control target key start
LH: loop header
LB: loop body
LE: loop exit
PB: predicated region body
PF: predicated region fallthrough
CT: control target
= control target key end

     0   :  { %6 = vsyncpa [#allocation3], 0  ;;  %s672_s0 = inlined_call_operand.hbm [shape: f32[32,512], index: 0, kind: input, shape index: {}]   ;;  %s673_s1 = inlined_call_operand.hbm [shape: f32[32,512], index: 1, kind: output, shape index: {}]  }
   0x1   :  { %8 = vsyncpa [#allocation3 + $0x1], 0 }
   0x2   :  { %9 = vsyncpa [#allocation4], 0 }
   0x3   :  { %11 = vsyncpa [#allocation4 + $0x1], 0  ;;  %s506_s6 = smov 0   ;;  %s508_s7 = smov 0  }
   0x4   :  { %s510_s8 = smov 0   ;;  %s512_s9 = smov 0  }
   0x5 LB: > { %s527_s10 = sadd.s32 4294967295, %s488_s9   ;;  %s290_s11 = sadd.s32 4294967294, %s488_s9   ;;  %s488_s9 = sphi %s512_s9, %s686_s9   ;;  %s484_s8 = sphi %s510_s8, %s685_s8   ;;  %s480_s7 = sphi %s508_s7, %s684_s7   ;;  %s476_s6 = sphi %s506_s6, %s683_s6  }
   0x6   : > { %s531_s12 = sadd.s32 1, %s488_s9   ;;  %s24_s13 = sadd.s32 1, %s484_s8 }
   0x7   : > { %s21_s14 = ssub.s32 %s488_s9, %s531_s12  ;;  %p31_p0 = scmp.ne.s32.totalorder %s484_s8, %s480_s7 }
   0x8   : > { %p22_p1 = scmp.eq.s32.totalorder %s21_s14, 0  ;;  %p32_p2 = scmp.eq.s32.totalorder %s488_s9, 0 }
   0x9   : > { %p37_p3 = scmp.ne.s32.totalorder %s480_s7, %s476_s6  ;;  %p38_p4 = scmp.eq.s32.totalorder %s527_s10, 0 }
   0xa   : > { %s543_s15 = scalar_select %p22_p1, %s484_s8, %s24_s13  }
   0xb   : > { %p545_p5 = por %p32_p2, %p31_p0  ;;  %p549_p6 = por %p38_p4, %p37_p3 }
   0xc   : > { %p61_p7 = scmp.eq.s32.totalorder %s527_s10, 1  ;;  %p67_p8 = scmp.eq.s32.totalorder %s290_s11, 1 }
   0xd   : > { %p322_p10 = scmp.lt.s32.totalorder %s488_s9, 2  ;;  %s87_s20 = sand.u32 1, %s484_s8  }
   0xe   : > { %p556_p11 = por %p61_p7, %p31_p0  ;;  %p560_p12 = por %p67_p8, %p37_p3 }
   0xf   : > { %s307_s21 = sshll.u32 %s488_s9, 10  ;;  %s293_s22 = sshll.u32 %s87_s20, 6 }
  0x10   : > { %s677_s18 = scalar_select %p556_p11, 1, 0 }
  0x11   : > { %s678_s19 = scalar_select %p560_p12, 1, 0 }
  0x12   : > { %s569_s25 = scalar_lea.hbm %s672_s0, %s307_s21  ;;  %s91_s26 = scalar_lea.vmem [#allocation2], %s293_s22 }
  0x13   : > { %s99_s27 = sshll.u32 %s91_s26, 4  ;;  %p573_p13 = pnand %p322_p10, %p545_p5  ;;  %s577_s27 = int_to_ptr.vmem [resolvable:$true] %s99_s27 }
  0x14   : > { %s579_s29 = scalar_lea.sflag [#allocation3], %s87_s20  ;;  %s392_s30 = scalar_lea.hbm %s569_s25, 1024 }
  0x15   : > { %p393_p0 = scmp.ne.s32.totalorder %s569_s25, %s392_s30  ;;  %p394_p1 = pneg %p573_p13 }
  0x16   : > { %s397_s4 = scalar_lea.hbm %s672_s0, 2048  ;;  %p398_p4 = scmp.lt.u32.totalorder %s569_s25, %s672_s0 }
  0x17   : > { %p395_p2 = pnand %p394_p1, %p393_p0  ;;  %p399_p5 = scmp.lt.u32.totalorder %s397_s4, %s392_s30 }
  0x18   : > { %p401_p8 = scmp.lt.u32.totalorder %s392_s30, %s569_s25 }
  0x19   : > { %p396_p3 = pneg %p395_p2  ;;  %p400_p7 = por %p399_p5, %p398_p4 }
  0x1b   : > { %p402_p10 = por %p401_p8, %p400_p7 }
  0x1d   : > { %p403_p9 = pnand %p402_p10, %p396_p3 }
  0x1f   : > { %406 = shalt.err (!%p403_p9)
}
  0x20   : > { %s407_s13 = scalar_lea.vmem %s577_s27, 1024  ;;  %s490_s14 = smov [#allocation2]  }
  0x21   : > { %p408_p0 = scmp.ne.s32.totalorder %s577_s27, %s407_s13  ;;  %s412_s16 = sshll.u32 %s490_s14, 4  ;;  %s413_s16 = int_to_ptr.vmem [resolvable:$false] %s412_s16 }
  0x22   : > { %s414_s20 = scalar_lea.vmem %s413_s16, 2048  ;;  %p415_p11 = scmp.lt.s32.totalorder %s577_s27, %s413_s16 }
  0x23   : > { %p410_p2 = pnand %p408_p0, %p394_p1  ;;  %p416_p4 = scmp.lt.s32.totalorder %s414_s20, %s407_s13 }
  0x25   : > { %p411_p12 = pneg %p410_p2  ;;  %p417_p5 = por %p416_p4, %p415_p11 }
  0x27   : > { %p418_p7 = pnand %p417_p5, %p411_p12 }
  0x29   : > { %421 = shalt.err (!%p418_p7)
}
  0x2a   : > { %s491_s21 = smov 512   ;;  %s492_s22 = smov 32  }
  0x2b   : > { %317 = dma.hbm_to_vmem [thread:$0]  (!%p573_p13), %s569_s25, 1024, %s577_s27, %s579_s29, %s491_s21, %s491_s21, %s492_s22  }
  0x2c   : > { %p297_p9 = scmp.ge.s32.totalorder %s488_s9, 1  ;;  %p107_p1 = scmp.lt.s32.totalorder %s488_s9, 3 }
  0x2e   : > { %p108_p3 = pnand %p297_p9, %p107_p1 }
  0x2f   : > { %s610_s23 = sand.u32 (!%p108_p3), 1, %s480_s7  }
  0x30   : > { %111 = sbr.rel (%p108_p3) target bundleno = 109 (0x6d), region = 24  ;;  %s298_s24 = sshll.u32 (!%p108_p3), %s610_s23, 6 }
  0x31   : > { %s114_s26 = scalar_lea.sflag (!%p108_p3), [#allocation3], %s610_s23  ;;  %s117_s30 = scalar_lea.vmem (!%p108_p3), [#allocation2], %s298_s24 }
  0x37   : > { %467 = dma.done.wait (%p549_p6), %s114_s26, 1024  }
  0x38   : > { %469 = vsyncadd (%p549_p6), %s114_s26, 4294966272  ;;  %v138_v0 = vld [vmem:[%s117_s30] sm:$0xff]  ;;  %v139_v1 = vld [vmem:[%s117_s30 + $0x8] sm:$0xff]  ;;  %s135_s17 = scalar_lea.vmem [#allocation5], %s298_s24  ;;  %s309_s27 = sshll.u32 %s527_s10, 10 }
  0x39   : > { %v140_v2 = vld [vmem:[%s117_s30 + $0x10] sm:$0xff]  ;;  %v146_v3 = vadd.f32 1e-08, %v138_v0  ;;  %v147_v4 = vadd.f32 1e-08, %v139_v1  ;;  %v141_v6 = vld [vmem:[%s117_s30 + $0x18] sm:$0xff]  ;;  %s628_s2 = scalar_lea.hbm %s673_s1, %s309_s27 }
  0x3a   : > { %v148_v5 = vadd.f32 1e-08, %v140_v2  ;;  %v142_v7 = vld [vmem:[%s117_s30 + $0x20] sm:$0xff]  ;;  %v143_v8 = vld [vmem:[%s117_s30 + $0x28] sm:$0xff]  ;;  %v149_v9 = vadd.f32 1e-08, %v141_v6 }
  0x3b   : > { %360 = vlog2.f32 %v146_v3  ;;  %v150_v10 = vadd.f32 1e-08, %v142_v7  ;;  %v151_v11 = vadd.f32 1e-08, %v143_v8  ;;  %v144_v12 = vld [vmem:[%s117_s30 + $0x30] sm:$0xff]  ;;  %v145_v13 = vld [vmem:[%s117_s30 + $0x38] sm:$0xff] }
  0x3c   : > { %362 = vlog2.f32 %v147_v4  ;;  %v152_v14 = vadd.f32 1e-08, %v144_v12  ;;  %v153_v15 = vadd.f32 1e-08, %v145_v13  ;;  %s217_s25 = sshll.u32 %s135_s17, 4  ;;  %s203_s10 = scalar_lea.sflag [#allocation4], %s610_s23  ;;  %s623_s25 = int_to_ptr.vmem [resolvable:$true] %s217_s25 }
  0x3d   : > { %364 = vlog2.f32 %v148_v5  ;;  %s422_s3 = scalar_lea.vmem %s623_s25, 1024  ;;  %p680_p11 = scmp.ne.s32.totalorder %s677_s18, 0 }
  0x3e   : > { %366 = vlog2.f32 %v149_v9  ;;  %p423_p6 = scmp.ne.s32.totalorder %s623_s25, %s422_s3  ;;  %s493_s4 = smov [#allocation5]  }
  0x3f   : > { %368 = vlog2.f32 %v150_v10  ;;  %s426_s5 = sshll.u32 %s493_s4, 4  ;;  %s427_s5 = int_to_ptr.vmem [resolvable:$false] %s426_s5 }
  0x40   : > { %370 = vlog2.f32 %v151_v11  ;;  %p424_p12 = pnand %p423_p6, %p680_p11  ;;  %s428_s11 = scalar_lea.vmem %s427_s5, 2048 }
  0x41   : > { %372 = vlog2.f32 %v152_v14  ;;  %p429_p8 = scmp.lt.s32.totalorder %s623_s25, %s427_s5  ;;  %p430_p10 = scmp.lt.s32.totalorder %s428_s11, %s422_s3 }
  0x42   : > { %374 = vlog2.f32 %v153_v15  ;;  %p425_p13 = pneg %p424_p12 }
  0x43   : > { %p431_p0 = por %p430_p10, %p429_p8 }
  0x45   : > { %v361_v16 = vpop.eup %360  ;;  %p432_p2 = pnand %p431_p0, %p425_p13 }
  0x46   : > { %v363_v17 = vpop.eup %362  ;;  %v155_v18 = vmul.f32 0.6931472, %v361_v16 }
  0x47   : > { %v365_v19 = vpop.eup %364  ;;  %v157_v20 = vmul.f32 0.6931472, %v363_v17 }
  0x48   : > { %v367_v21 = vpop.eup %366  ;;  %v170_v22 = vmul.f32 0.3, %v155_v18  ;;  %v159_v23 = vmul.f32 0.6931472, %v365_v19 }
  0x49   : > { %v369_v24 = vpop.eup %368  ;;  %v171_v25 = vmul.f32 0.3, %v157_v20  ;;  %v161_v26 = vmul.f32 0.6931472, %v367_v21 }
  0x4a   : > { %v371_v27 = vpop.eup %370  ;;  %v178_v28 = vmul.f32 1.442695, %v170_v22  ;;  %v172_v29 = vmul.f32 0.3, %v159_v23  ;;  %v163_v30 = vmul.f32 0.6931472, %v369_v24 }
  0x4b   : > { %v373_v31 = vpop.eup %372  ;;  %v180_v32 = vmul.f32 1.442695, %v171_v25  ;;  %v173_v33 = vmul.f32 0.3, %v161_v26  ;;  %v165_v34 = vmul.f32 0.6931472, %v371_v27 }
  0x4c   : > { %v375_v35 = vpop.eup %374  ;;  %376 = vpow2.f32 %v178_v28  ;;  %v182_v36 = vmul.f32 1.442695, %v172_v29  ;;  %v174_v37 = vmul.f32 0.3, %v163_v30  ;;  %v167_v38 = vmul.f32 0.6931472, %v373_v31 }
  0x4d   : > { %378 = vpow2.f32 %v180_v32  ;;  %v184_v39 = vmul.f32 1.442695, %v173_v33  ;;  %v175_v40 = vmul.f32 0.3, %v165_v34  ;;  %v169_v41 = vmul.f32 0.6931472, %v375_v35 }
  0x4e   : > { %380 = vpow2.f32 %v182_v36  ;;  %v186_v42 = vmul.f32 1.442695, %v174_v37  ;;  %v176_v43 = vmul.f32 0.3, %v167_v38 }
  0x4f   : > { %382 = vpow2.f32 %v184_v39  ;;  %v188_v44 = vmul.f32 1.442695, %v175_v40  ;;  %v177_v45 = vmul.f32 0.3, %v169_v41 }
  0x50   : > { %384 = vpow2.f32 %v186_v42  ;;  %v190_v46 = vmul.f32 1.442695, %v176_v43 }
  0x51   : > { %386 = vpow2.f32 %v188_v44  ;;  %v192_v47 = vmul.f32 1.442695, %v177_v45 }
  0x52   : > { %388 = vpow2.f32 %v190_v46 }
  0x53   : > { %390 = vpow2.f32 %v192_v47 }
  0x56   : > { %v377_v48 = vpop.eup %376 }
  0x57   : > { %v379_v49 = vpop.eup %378  ;;  %194 = vst [vmem:[%s135_s17] sm:$0xff] %v377_v48 }
  0x58   : > { %v381_v50 = vpop.eup %380  ;;  %195 = vst [vmem:[%s135_s17 + $0x8] sm:$0xff] %v379_v49 }
  0x59   : > { %v383_v51 = vpop.eup %382  ;;  %196 = vst [vmem:[%s135_s17 + $0x10] sm:$0xff] %v381_v50 }
  0x5a   : > { %v385_v52 = vpop.eup %384  ;;  %197 = vst [vmem:[%s135_s17 + $0x18] sm:$0xff] %v383_v51 }
  0x5b   : > { %v387_v53 = vpop.eup %386  ;;  %198 = vst [vmem:[%s135_s17 + $0x20] sm:$0xff] %v385_v52 }
  0x5c   : > { %v389_v54 = vpop.eup %388  ;;  %199 = vst [vmem:[%s135_s17 + $0x28] sm:$0xff] %v387_v53 }
  0x5d   : > { %v391_v55 = vpop.eup %390  ;;  %200 = vst [vmem:[%s135_s17 + $0x30] sm:$0xff] %v389_v54 }
  0x5e   : > { %201 = vst [vmem:[%s135_s17 + $0x38] sm:$0xff] %v391_v55 }
  0x5f   : > { %435 = shalt.err (!%p432_p2)
}
  0x60   : > { %s436_s13 = scalar_lea.hbm %s628_s2, 1024  ;;  %s440_s20 = scalar_lea.hbm %s673_s1, 2048 }
  0x61   : > { %p437_p4 = scmp.ne.s32.totalorder %s628_s2, %s436_s13  ;;  %p441_p9 = scmp.lt.u32.totalorder %s628_s2, %s673_s1 }
  0x62   : > { %p442_p1 = scmp.lt.u32.totalorder %s440_s20, %s436_s13  ;;  %p444_p6 = scmp.lt.u32.totalorder %s436_s13, %s628_s2 }
  0x63   : > { %p438_p5 = pnand %p437_p4, %p680_p11 }
  0x64   : > { %p443_p3 = por %p442_p1, %p441_p9 }
  0x65   : > { %p439_p7 = pneg %p438_p5 }
  0x66   : > { %p445_p12 = por %p444_p6, %p443_p3 }
  0x68   : > { %p446_p13 = pnand %p445_p12, %p439_p7 }
  0x6a   : > { %449 = shalt.err (!%p446_p13)
}
  0x6b   : > { %s494_s24 = smov 512   ;;  %s495_s26 = smov 32  }
  0x6c   : > { %312 = dma.vmem_to_hbm [thread:$0]  (%p680_p11), %s623_s25, 1024, %s628_s2, %s203_s10, %s494_s24, %s494_s24, %s495_s26  }
  0x6d PF: > { %s232_s30 = sand.u32 1, %s476_s6   ;;  %p681_p8 = scmp.ne.s32.totalorder %s678_s19, 0 }
  0x6e   : > { %p682_p10 = scmp.ge.s32.totalorder %s488_s9, 2  ;;  %s233_s17 = scalar_lea.sflag [#allocation4], %s232_s30 }
  0x70   : > { %p319_p0 = pnand %p682_p10, %p681_p8 }
  0x72   : > { %471 = dma.done.wait (!%p319_p0), %s233_s17, 1024  }
  0x73   : > { %473 = vsyncadd (!%p319_p0), %s233_s17, 4294966272  ;;  %p14_p2 = scmp.ge.s32.totalorder %s531_s12, 4   ;;  %s683_s6 = smov %s480_s7 }
  0x74   : > { %s684_s7 = smov %s484_s8  ;;  %s685_s8 = smov %s543_s15 }
  0x75   : > { %s686_s9 = smov %s531_s12  ;;  %16 = sbr.rel (!%p14_p2) target bundleno = 5 (0x5), region = 69 }
  0x7c   :  { %238 = vsyncpa [#allocation3], 1 }
  0x7d   :  { %240 = vsyncpa [#allocation3 + $0x1], 1 }
  0x7e   :  { %241 = vsyncpa [#allocation4], 1 }
  0x7f   :  { %243 = vsyncpa [#allocation4 + $0x1], 1 }

</bundles_post_ra>
